<compile_context>
chip_gen: v5e
topology: v5e:2x2
jax: 0.10.0
libtpu: 0.0.40
codegen_flags: <defaults>
</compile_context>

<pallas_src>
import jax
import jax.numpy as jnp
from jax.experimental import pallas as pl
from jax.experimental.pallas import tpu as pltpu

LANES = 128          # lane width: last-dim padding target (lane-dense stores)
BF16_SUBLANES = 16   # bf16 sublane packing: row padding of the weight slab
F32_SUBLANES = 8     # f32 sublane packing: row padding of the bias slab


def _round_up(x: int, m: int) -> int:
    return ((x + m - 1) // m) * m


def dnn_kernel(dir_ref, food_ref, body_ref, wall_ref, w_ref, b_ref, o_ref):
    """Fused 4-layer MLP; one grid step processes a (TB, .) batch tile."""
    tb = dir_ref.shape[0]
    n_pad = w_ref.shape[1]               # padded hidden/output width (128)
    k1 = w_ref.shape[0] - 3 * n_pad      # padded input width of layer 1 (16)

    # Fused torch.cat([...], dim=1), zero-padded to the slab's K1 rows
    # (padding rows of W1 in the slab are zero, so the extra columns are inert).
    feats = [dir_ref[...], food_ref[...], body_ref[...], wall_ref[...]]
    n_feat = sum(f.shape[1] for f in feats)
    if k1 > n_feat:
        feats.append(jnp.zeros((tb, k1 - n_feat), feats[0].dtype))
    x = jnp.concatenate(feats, axis=1).astype(jnp.bfloat16)       # (TB, K1)

    def layer(h_bf16, row_lo, row_hi, b_row, relu):
        acc = jnp.dot(h_bf16, w_ref[row_lo:row_hi, :],
                      preferred_element_type=jnp.float32)          # MXU, f32 acc
        acc = acc + b_ref[b_row:b_row + 1, :]                      # f32 bias (1, N)
        return jnp.maximum(acc, 0.0) if relu else acc

    h = layer(x, 0, k1, 0, True)
    h = layer(h.astype(jnp.bfloat16), k1, k1 + n_pad, 1, True)
    h = layer(h.astype(jnp.bfloat16), k1 + n_pad, k1 + 2 * n_pad, 2, True)
    out = layer(h.astype(jnp.bfloat16), k1 + 2 * n_pad, k1 + 3 * n_pad, 3, False)
    o_ref[...] = out.astype(o_ref.dtype)


def dnn_forward_impl(direction, food_distance, snake_body_danger, snake_wall_danger,
                     board_tensor, packed_params, *, out_size, block_rows=512):
    # board_tensor is unused by the PyTorch forward; kept for signature parity.
    del board_tensor
    w_slab, b_slab = packed_params
    n_pad = w_slab.shape[1]

    feats = (direction, food_distance, snake_body_danger, snake_wall_danger)
    batch = direction.shape[0]
    tb = batch if batch <= block_rows else block_rows        # TB == B or multiple of 8
    batch_pad = _round_up(batch, tb)
    if batch_pad != batch:                                   # only for ragged large batches
        feats = tuple(jnp.pad(f, ((0, batch_pad - batch), (0, 0))) for f in feats)

    def batch_spec(cols):
        return pl.BlockSpec((tb, cols), lambda i: (i, 0))
    resident = lambda i: (0, 0)      # same block each step -> params stay VMEM-resident

    out = pl.pallas_call(
        dnn_kernel,
        grid=(batch_pad // tb,),
        in_specs=[batch_spec(f.shape[1]) for f in feats] + [
            pl.BlockSpec(w_slab.shape, resident),
            pl.BlockSpec(b_slab.shape, resident),
        ],
        out_specs=pl.BlockSpec((tb, n_pad), lambda i: (i, 0)),
        out_shape=jax.ShapeDtypeStruct((batch_pad, n_pad), direction.dtype),
        compiler_params=pltpu.CompilerParams(dimension_semantics=("parallel",)),
    )(*feats, w_slab, b_slab)
    return out[:batch, :out_size]        # drop lane / batch padding


dnn_forward = jax.jit(dnn_forward_impl, static_argnames=("out_size", "block_rows"))


def pack_params(params, compute_dtype=jnp.bfloat16):
    """One-time host-side packing:
       * weights -> single lane-dense bf16 slab (K1 + 3*N_pad, N_pad)
       * biases  -> single f32 (8, N_pad) slab, rows 0..3 = b1..b4
    Zero padding keeps the padded hidden columns exactly zero through every
    ReLU layer, so the math is unchanged."""
    w1, b1, w2, b2, w3, b3, w4, b4 = params
    hid, out_f = w1.shape[1], w4.shape[1]
    n_pad = max(_round_up(hid, LANES), _round_up(out_f, LANES))
    k1 = _round_up(w1.shape[0], BF16_SUBLANES)

    def pad2(a, rows, cols):
        buf = jnp.zeros((rows, cols), jnp.float32)
        return buf.at[: a.shape[0], : a.shape[1]].set(a.astype(jnp.float32))

    w_slab = jnp.concatenate(
        [pad2(w1, k1, n_pad), pad2(w2, n_pad, n_pad),
         pad2(w3, n_pad, n_pad), pad2(w4, n_pad, n_pad)],
        axis=0).astype(compute_dtype)                        # (k1 + 3*n_pad, n_pad)

    b_slab = jnp.zeros((F32_SUBLANES, n_pad), jnp.float32)   # (8, n_pad), rows 0..3 used
    for i, b in enumerate((b1, b2, b3, b4)):
        bv = b.reshape(-1).astype(jnp.float32)
        b_slab = b_slab.at[i, : bv.shape[0]].set(bv)
    return (w_slab, b_slab)


def init_params(key, input_size, hidden_size, output_size, dtype=jnp.float32):
    """Deterministic PyTorch-style uniform(-1/sqrt(fan_in), 1/sqrt(fan_in)) init."""
    dims = [(input_size, hidden_size),
            (hidden_size, hidden_size),
            (hidden_size, hidden_size),
            (hidden_size, output_size)]
    params = []
    for (fan_in, fan_out) in dims:
        key, kw, kb = jax.random.split(key, 3)
        bound = 1.0 / (fan_in ** 0.5)
        w = jax.random.uniform(kw, (fan_in, fan_out), dtype, -bound, bound)
        b = jax.random.uniform(kb, (1, fan_out), dtype, -bound, bound)
        params += [w, b]
    return params


def dnn_reference(direction, food_distance, snake_body_danger, snake_wall_danger,
                  params):
    x = jnp.concatenate(
        [direction, food_distance, snake_body_danger, snake_wall_danger], axis=1)
    w1, b1, w2, b2, w3, b3, w4, b4 = params
    h = jax.nn.relu(x @ w1 + b1)
    h = jax.nn.relu(h @ w2 + b2)
    h = jax.nn.relu(h @ w3 + b3)
    return h @ w4 + b4


if __name__ == "__main__":
    key = jax.random.PRNGKey(0)
    batch, hidden_size, output_size = 2, 32, 4

    # Feature splits that sum to the module's fixed input_size = 12.
    k1, k2, k3, k4, k5, kp = jax.random.split(key, 6)
    direction = jax.random.normal(k1, (batch, 4), jnp.float32)
    food_distance = jax.random.normal(k2, (batch, 2), jnp.float32)
    snake_body_danger = jax.random.normal(k3, (batch, 3), jnp.float32)
    snake_wall_danger = jax.random.normal(k4, (batch, 3), jnp.float32)
    board_tensor = jax.random.normal(k5, (batch, 8, 8), jnp.float32)  # unused, parity only

    params = init_params(kp, 12, hidden_size, output_size)
    packed = pack_params(params)     # one-time weight prep (like the torch->jax transpose)

    out = dnn_forward(direction, food_distance, snake_body_danger, snake_wall_danger,
                      board_tensor, packed, out_size=output_size)
    out = jax.block_until_ready(out)

    ref = dnn_reference(direction, food_distance, snake_body_danger,
                        snake_wall_danger, params)
    assert out.shape == (batch, output_size)
    # bf16 matmul operands (f32 accumulate) -> loosened tolerance vs f32 reference.
    assert jnp.allclose(out, ref, atol=2e-2, rtol=2e-2), float(jnp.max(jnp.abs(out - ref)))
    print("KERNEL_OK")
</pallas_src>

<mosaic_0001>
module attributes {stable_mosaic.version = 11 : i64} {
  func.func @dnn_kernel(%arg0: i32, %arg1: memref<2x4xf32, #tpu.memory_space<vmem>>, %arg2: memref<2x2xf32, #tpu.memory_space<vmem>>, %arg3: memref<2x3xf32, #tpu.memory_space<vmem>>, %arg4: memref<2x3xf32, #tpu.memory_space<vmem>>, %arg5: memref<400x128xbf16, #tpu.memory_space<vmem>>, %arg6: memref<8x128xf32, #tpu.memory_space<vmem>>, %arg7: memref<2x128xf32, #tpu.memory_space<vmem>>) attributes {dimension_semantics = [#tpu.dimension_semantics<parallel>], iteration_bounds = array<i64: 1>, scalar_prefetch = 0 : i64, scratch_operands = 0 : i64, tpu.core_type = #tpu.core_type<tc>, window_params = [{transform_indices = @transform_0, window_bounds = array<i64: 2, 4>}, {transform_indices = @transform_1, window_bounds = array<i64: 2, 2>}, {transform_indices = @transform_2, window_bounds = array<i64: 2, 3>}, {transform_indices = @transform_3, window_bounds = array<i64: 2, 3>}, {pipeline_mode = #tpu.pipeline_mode<synchronous>, transform_indices = @transform_4, window_bounds = array<i64: 400, 128>}, {pipeline_mode = #tpu.pipeline_mode<synchronous>, transform_indices = @transform_5, window_bounds = array<i64: 8, 128>}, {transform_indices = @transform_6, window_bounds = array<i64: 2, 128>}]} {
    %c0 = arith.constant 0 : index
    %c0_0 = arith.constant 0 : index
    %0 = vector.load %arg1[%c0, %c0_0] : memref<2x4xf32, #tpu.memory_space<vmem>>, vector<2x4xf32>
    %c0_1 = arith.constant 0 : index
    %c0_2 = arith.constant 0 : index
    %1 = vector.load %arg2[%c0_1, %c0_2] : memref<2x2xf32, #tpu.memory_space<vmem>>, vector<2x2xf32>
    %c0_3 = arith.constant 0 : index
    %c0_4 = arith.constant 0 : index
    %2 = vector.load %arg3[%c0_3, %c0_4] : memref<2x3xf32, #tpu.memory_space<vmem>>, vector<2x3xf32>
    %c0_5 = arith.constant 0 : index
    %c0_6 = arith.constant 0 : index
    %3 = vector.load %arg4[%c0_5, %c0_6] : memref<2x3xf32, #tpu.memory_space<vmem>>, vector<2x3xf32>
    %cst = arith.constant 0.000000e+00 : f32
    %4 = vector.broadcast %cst : f32 to vector<2x4xf32>
    %5 = tpu.concatenate %0, %1, %2, %3, %4 in 1 : vector<2x4xf32>, vector<2x2xf32>, vector<2x3xf32>, vector<2x3xf32>, vector<2x4xf32> -> vector<2x16xf32>
    %6 = arith.truncf %5 : vector<2x16xf32> to vector<2x16xbf16>
    %c0_7 = arith.constant 0 : index
    %c0_8 = arith.constant 0 : index
    %7 = vector.load %arg5[%c0_7, %c0_8] : memref<400x128xbf16, #tpu.memory_space<vmem>>, vector<16x128xbf16>
    %cst_9 = arith.constant dense<0.000000e+00> : vector<2x128xf32>
    %8 = tpu.matmul %6, %7, %cst_9 {dimension_numbers = #tpu.dot_dimension_numbers<[1], [0], [0], [1], [0, 0, 1, 1], [], []>} : vector<2x16xbf16>, vector<16x128xbf16>, vector<2x128xf32> -> vector<2x128xf32>
    %c0_10 = arith.constant 0 : index
    %c0_11 = arith.constant 0 : index
    %9 = vector.load %arg6[%c0_10, %c0_11] : memref<8x128xf32, #tpu.memory_space<vmem>>, vector<1x128xf32>
    %10 = vector.broadcast %9 : vector<1x128xf32> to vector<2x128xf32>
    %11 = arith.addf %8, %10 : vector<2x128xf32>
    %cst_12 = arith.constant 0.000000e+00 : f32
    %12 = vector.broadcast %cst_12 : f32 to vector<2x128xf32>
    %13 = arith.maximumf %11, %12 : vector<2x128xf32>
    %14 = arith.truncf %13 : vector<2x128xf32> to vector<2x128xbf16>
    %c16 = arith.constant 16 : index
    %c0_13 = arith.constant 0 : index
    %15 = vector.load %arg5[%c16, %c0_13] : memref<400x128xbf16, #tpu.memory_space<vmem>>, vector<128x128xbf16>
    %cst_14 = arith.constant dense<0.000000e+00> : vector<2x128xf32>
    %16 = tpu.matmul %14, %15, %cst_14 {dimension_numbers = #tpu.dot_dimension_numbers<[1], [0], [0], [1], [0, 0, 1, 1], [], []>} : vector<2x128xbf16>, vector<128x128xbf16>, vector<2x128xf32> -> vector<2x128xf32>
    %c1 = arith.constant 1 : index
    %c0_15 = arith.constant 0 : index
    %17 = vector.load %arg6[%c1, %c0_15] : memref<8x128xf32, #tpu.memory_space<vmem>>, vector<1x128xf32>
    %18 = vector.broadcast %17 : vector<1x128xf32> to vector<2x128xf32>
    %19 = arith.addf %16, %18 : vector<2x128xf32>
    %cst_16 = arith.constant 0.000000e+00 : f32
    %20 = vector.broadcast %cst_16 : f32 to vector<2x128xf32>
    %21 = arith.maximumf %19, %20 : vector<2x128xf32>
    %22 = arith.truncf %21 : vector<2x128xf32> to vector<2x128xbf16>
    %c144 = arith.constant 144 : index
    %c0_17 = arith.constant 0 : index
    %23 = vector.load %arg5[%c144, %c0_17] : memref<400x128xbf16, #tpu.memory_space<vmem>>, vector<128x128xbf16>
    %cst_18 = arith.constant dense<0.000000e+00> : vector<2x128xf32>
    %24 = tpu.matmul %22, %23, %cst_18 {dimension_numbers = #tpu.dot_dimension_numbers<[1], [0], [0], [1], [0, 0, 1, 1], [], []>} : vector<2x128xbf16>, vector<128x128xbf16>, vector<2x128xf32> -> vector<2x128xf32>
    %c2 = arith.constant 2 : index
    %c0_19 = arith.constant 0 : index
    %25 = vector.load %arg6[%c2, %c0_19] : memref<8x128xf32, #tpu.memory_space<vmem>>, vector<1x128xf32>
    %26 = vector.broadcast %25 : vector<1x128xf32> to vector<2x128xf32>
    %27 = arith.addf %24, %26 : vector<2x128xf32>
    %cst_20 = arith.constant 0.000000e+00 : f32
    %28 = vector.broadcast %cst_20 : f32 to vector<2x128xf32>
    %29 = arith.maximumf %27, %28 : vector<2x128xf32>
    %30 = arith.truncf %29 : vector<2x128xf32> to vector<2x128xbf16>
    %c272 = arith.constant 272 : index
    %c0_21 = arith.constant 0 : index
    %31 = vector.load %arg5[%c272, %c0_21] : memref<400x128xbf16, #tpu.memory_space<vmem>>, vector<128x128xbf16>
    %cst_22 = arith.constant dense<0.000000e+00> : vector<2x128xf32>
    %32 = tpu.matmul %30, %31, %cst_22 {dimension_numbers = #tpu.dot_dimension_numbers<[1], [0], [0], [1], [0, 0, 1, 1], [], []>} : vector<2x128xbf16>, vector<128x128xbf16>, vector<2x128xf32> -> vector<2x128xf32>
    %c3 = arith.constant 3 : index
    %c0_23 = arith.constant 0 : index
    %33 = vector.load %arg6[%c3, %c0_23] : memref<8x128xf32, #tpu.memory_space<vmem>>, vector<1x128xf32>
    %34 = vector.broadcast %33 : vector<1x128xf32> to vector<2x128xf32>
    %35 = arith.addf %32, %34 : vector<2x128xf32>
    %c0_24 = arith.constant 0 : index
    %c0_25 = arith.constant 0 : index
    %36 = vector.load %arg7[%c0_24, %c0_25] : memref<2x128xf32, #tpu.memory_space<vmem>>, vector<2x128xf32>
    tpu.vector_store %arg7[%c0_24, %c0_25], %35 {strides = array<i32>} : memref<2x128xf32, #tpu.memory_space<vmem>>, vector<2x128xf32>,
    return
  }
  func.func @transform_0(%arg0: i32) -> (i32, i32) {
    %c0_i32 = arith.constant 0 : i32
    %c0_i32_0 = arith.constant 0 : i32
    return %arg0, %c0_i32 : i32, i32
  }
  func.func @transform_1(%arg0: i32) -> (i32, i32) {
    %c0_i32 = arith.constant 0 : i32
    %c0_i32_0 = arith.constant 0 : i32
    return %arg0, %c0_i32 : i32, i32
  }
  func.func @transform_2(%arg0: i32) -> (i32, i32) {
    %c0_i32 = arith.constant 0 : i32
    %c0_i32_0 = arith.constant 0 : i32
    return %arg0, %c0_i32 : i32, i32
  }
  func.func @transform_3(%arg0: i32) -> (i32, i32) {
    %c0_i32 = arith.constant 0 : i32
    %c0_i32_0 = arith.constant 0 : i32
    return %arg0, %c0_i32 : i32, i32
  }
  func.func @transform_4(%arg0: i32) -> (i32, i32) {
    %c0_i32 = arith.constant 0 : i32
    %c0_i32_0 = arith.constant 0 : i32
    %c0_i32_1 = arith.constant 0 : i32
    return %c0_i32, %c0_i32_0 : i32, i32
  }
  func.func @transform_5(%arg0: i32) -> (i32, i32) {
    %c0_i32 = arith.constant 0 : i32
    %c0_i32_0 = arith.constant 0 : i32
    %c0_i32_1 = arith.constant 0 : i32
    return %c0_i32, %c0_i32_0 : i32, i32
  }
  func.func @transform_6(%arg0: i32) -> (i32, i32) {
    %c0_i32 = arith.constant 0 : i32
    %c0_i32_0 = arith.constant 0 : i32
    return %arg0, %c0_i32 : i32, i32
  }
}

</mosaic_0001>

<bundles_post_ra>
// kernel: dnn_forward_impl.1
= control target key start
LH: loop header
LB: loop body
LE: loop exit
PB: predicated region body
PF: predicated region fallthrough
CT: control target
= control target key end

     0   :  { %11 = vsyncpa [#allocation3], 0  ;;  %s768_s0 = inlined_call_operand.hbm [shape: f32[2,4], index: 0, kind: input, shape index: {}]   ;;  %s769_s1 = inlined_call_operand.hbm [shape: f32[2,2], index: 1, kind: input, shape index: {}]   ;;  %s770_s2 = inlined_call_operand.hbm [shape: f32[2,3], index: 2, kind: input, shape index: {}]   ;;  %s771_s3 = inlined_call_operand.vmem [shape: f32[2,3], index: 3, kind: input, shape index: {}]   ;;  %s772_s4 = inlined_call_operand.hbm [shape: bf16[400,128], index: 4, kind: input, shape index: {}]   ;;  %s773_s5 = inlined_call_operand.hbm [shape: f32[8,128], index: 5, kind: input, shape index: {}]   ;;  %s774_s6 = inlined_call_operand.hbm [shape: f32[2,128], index: 6, kind: output, shape index: {}]  }
   0x1   :  { %12 = vsyncpa [#allocation6], 0 }
   0x2   :  { %13 = vsyncpa [#allocation9], 0  ;;  %s31_s23 = sshll.u32 %s769_s1, 4  ;;  %s32_s23 = int_to_ptr.hbm [resolvable:$true] %s31_s23 }
   0x3   :  { %14 = vsyncpa [#allocation4], 0  ;;  %s702_s24 = smov [#allocation5]   ;;  %s54_s28 = sshll.u32 %s772_s4, 4  ;;  %s55_s28 = int_to_ptr.hbm [resolvable:$true] %s54_s28 }
   0x4   :  { %s33_s25 = sshll.u32 %s702_s24, 4  ;;  %s703_s29 = smov [#allocation8]   ;;  %s34_s25 = int_to_ptr.vmem [resolvable:$true] %s33_s25 }
   0x5   :  { %36 = dma.hbm_to_vmem [thread:$0]  %s32_s23, 32, %s34_s25, [#allocation6]  }
   0x6   :  { %s56_s30 = sshll.u32 %s703_s29, 4  ;;  %s704_s7 = smov 64   ;;  %s57_s30 = int_to_ptr.vmem [resolvable:$true] %s56_s30 }
   0x7   :  { %s705_s8 = smov 4   ;;  %s20_s1 = sshll.u32 %s768_s0, 4  ;;  %s21_s1 = int_to_ptr.hbm [resolvable:$true] %s20_s1 }
   0x8   :  { %62 = dma.hbm_to_vmem [thread:$0]  %s55_s28, 3200, %s57_s30, [#allocation9], %s704_s7, %s704_s7, %s705_s8  }
   0x9   :  { %s706_s11 = smov [#allocation2]   ;;  %s42_s4 = sshll.u32 %s770_s2, 4  ;;  %s43_s4 = int_to_ptr.hbm [resolvable:$true] %s42_s4 }
   0xa   :  { %s22_s12 = sshll.u32 %s706_s11, 4  ;;  %s707_s15 = smov [#allocation7]   ;;  %s23_s12 = int_to_ptr.vmem [resolvable:$true] %s22_s12 }
   0xb   :  { %25 = dma.hbm_to_vmem [thread:$0]  %s21_s1, 32, %s23_s12, [#allocation3]  }
   0xc   :  { %s44_s16 = sshll.u32 %s707_s15, 4  ;;  %s68_s19 = sshll.u32 %s773_s5, 4  ;;  %s45_s16 = int_to_ptr.vmem [resolvable:$true] %s44_s16  ;;  %s69_s19 = int_to_ptr.hbm [resolvable:$true] %s68_s19 }
   0xd   :  { %47 = dma.hbm_to_vmem [thread:$0]  %s43_s4, 32, %s45_s16, [#allocation6]  }
   0xe   :  { %s708_s0 = smov [#allocation10]  }
   0xf   :  { %s70_s20 = sshll.u32 %s708_s0, 4  ;;  %s71_s20 = int_to_ptr.vmem [resolvable:$true] %s70_s20 }
  0x10   :  { %73 = dma.hbm_to_vmem [thread:$0]  %s69_s19, 128, %s71_s20, [#allocation9]  }
  0x11   :  { %694 = dma.done.wait [#allocation3], 32  }
  0x12   :  { %695 = vsyncadd [#allocation3], 4294967264 }
  0x13   :  { %696 = dma.done.wait [#allocation6], 64  }
  0x14   :  { %697 = vsyncadd [#allocation6], 4294967232 }
  0x15   :  { %698 = dma.done.wait [#allocation9], 3328  }
  0x16   :  { %699 = vsyncadd [#allocation9], 4294963968  ;;  %v96_v0 = vld [vmem:[#allocation5] sm:$0x3]  ;;  %v98_v1 = vld [vmem:[%s771_s3] sm:$0x3] }
  0x17   :  { %100 = vrot.lane.b32.xlu0 %v96_v0, %s705_s8  ;;  %s709_s5 = smov 9   ;;  %v97_v2 = vld [vmem:[#allocation7] sm:$0x3]  ;;  %s710_s22 = smov 6   ;;  %v511_v3 = vld [vmem:[#allocation8] sm:$0xff]  ;;  %v517_v6 = vld [vmem:[#allocation8 + $0x30] sm:$0xff] }
  0x18   :  { %108 = vrot.lane.b32.xlu1 %v98_v1, %s709_s5  ;;  %141 = vmatpush.bf16.msra.mxu0 %v511_v3  ;;  %v519_v4 = vld [vmem:[#allocation8 + $0x40] sm:$0xff]  ;;  %v518_v5 = vld [vmem:[#allocation8 + $0x38] sm:$0xff]  ;;  %v516_v7 = vld [vmem:[#allocation8 + $0x28] sm:$0xff]  ;;  %vm111_vm0 = vcmask 31744   ;;  %vm113_vm1 = vcmask 48128   ;;  %vm115_vm2 = vcmask 72704  }
  0x19   :  { %215 = vmatpush.bf16.msra.mxu1 %v519_v4  ;;  %v515_v8 = vld [vmem:[#allocation8 + $0x20] sm:$0xff]  ;;  %v514_v10 = vld [vmem:[#allocation8 + $0x18] sm:$0xff]  ;;  %vm117_vm3 = vcmask 97280   ;;  %vm130_vm4 = vcmask 130048   ;;  %v513_v19 = vld [vmem:[#allocation8 + $0x10] sm:$0xff]  ;;  %s711_s3 = smov [#allocation11]  }
  0x1a   :  { %v95_v11 = vld [vmem:[#allocation2] sm:$0x3]  ;;  %v512_v20 = vld [vmem:[#allocation8 + $0x8] sm:$0xff]  ;;  %v527_v21 = vld [vmem:[#allocation8 + $0x80] sm:$0xff]  ;;  %s396_s23 = sshll.u32 %s711_s3, 4  ;;  %s398_s26 = sshll.u32 %s774_s6, 4  ;;  %s397_s23 = int_to_ptr.vmem [resolvable:$true] %s396_s23  ;;  %s399_s26 = int_to_ptr.hbm [resolvable:$true] %s398_s26 }
  0x1b   :  { %296 = vmatpush.bf16.msra.mxu2 %v527_v21  ;;  %v526_v22 = vld [vmem:[#allocation8 + $0x78] sm:$0xff]  ;;  %v525_v23 = vld [vmem:[#allocation8 + $0x70] sm:$0xff]  ;;  %v524_v24 = vld [vmem:[#allocation8 + $0x68] sm:$0xff] }
  0x1c   :  { %v523_v25 = vld [vmem:[#allocation8 + $0x60] sm:$0xff]  ;;  %v522_v26 = vld [vmem:[#allocation8 + $0x58] sm:$0xff]  ;;  %v546_v27 = vld [vmem:[#allocation10] ss:$0 sm:$0xff] }
  0x1d   :  { %216 = vmatpush.bf16.msra.mxu1 %v518_v5  ;;  %v521_v33 = vld [vmem:[#allocation8 + $0x50] sm:$0xff]  ;;  %v520_v34 = vld [vmem:[#allocation8 + $0x48] sm:$0xff]  ;;  %v535_v35 = vld [vmem:[#allocation8 + $0xc0] sm:$0xff] }
  0x1e   :  { %377 = vmatpush.bf16.msra.mxu3 %v535_v35  ;;  %v534_v36 = vld [vmem:[#allocation8 + $0xb8] sm:$0xff]  ;;  %v533_v37 = vld [vmem:[#allocation8 + $0xb0] sm:$0xff]  ;;  %v532_v38 = vld [vmem:[#allocation8 + $0xa8] sm:$0xff] }
  0x1f   :  { %104 = vrot.lane.b32.xlu0 %v97_v2, %s710_s22  ;;  %297 = vmatpush.bf16.msra.mxu2 %v526_v22  ;;  %v531_v39 = vld [vmem:[#allocation8 + $0xa0] sm:$0xff]  ;;  %v530_v40 = vld [vmem:[#allocation8 + $0x98] sm:$0xff]  ;;  %v547_v41 = vld [vmem:[#allocation10 + $0x1] ss:$0 sm:$0xff] }
  0x20   :  { %v529_v47 = vld [vmem:[#allocation8 + $0x90] sm:$0xff]  ;;  %v528_v48 = vld [vmem:[#allocation8 + $0x88] sm:$0xff] }
  0x21   :  { %217 = vmatpush.bf16.msra.mxu1 %v517_v6  ;;  %v548_v49 = vld [vmem:[#allocation10 + $0x2] ss:$0 sm:$0xff]  ;;  %v549_v55 = vld [vmem:[#allocation10 + $0x3] ss:$0 sm:$0xff] }
  0x22   :  { %378 = vmatpush.bf16.msra.mxu3 %v534_v36 }
  0x23   :  { %298 = vmatpush.bf16.msra.mxu2 %v525_v23 }
  0x25   :  { %218 = vmatpush.bf16.msra.mxu1 %v516_v7 }
  0x26   :  { %379 = vmatpush.bf16.msra.mxu3 %v533_v37 }
  0x27   :  { %299 = vmatpush.bf16.msra.mxu2 %v524_v24 }
  0x29   :  { %219 = vmatpush.bf16.msra.mxu1 %v515_v8 }
  0x2a   :  { %380 = vmatpush.bf16.msra.mxu3 %v532_v38 }
  0x2b   :  { %300 = vmatpush.bf16.msra.mxu2 %v523_v25 }
  0x2d   :  { %220 = vmatpush.bf16.msra.mxu1 %v514_v10 }
  0x2e   :  { %381 = vmatpush.bf16.msra.mxu3 %v531_v39 }
  0x2f   :  { %301 = vmatpush.bf16.msra.mxu2 %v522_v26 }
  0x31   :  { %221 = vmatpush.bf16.msra.mxu1 %v513_v19 }
  0x32   :  { %382 = vmatpush.bf16.msra.mxu3 %v530_v40 }
  0x33   :  { %302 = vmatpush.bf16.msra.mxu2 %v521_v33 }
  0x35   :  { %222 = vmatpush.bf16.msra.mxu1 %v512_v20 }
  0x36   :  { %383 = vmatpush.bf16.msra.mxu3 %v529_v47 }
  0x37   :  { %303 = vmatpush.bf16.msra.mxu2 %v520_v34 }
  0x3a   :  { %384 = vmatpush.bf16.msra.mxu3 %v528_v48 }
  0x89   :  { %v101_v9 = vpop.permute.xlu0 %100 }
  0x8a   :  { %v109_v12 = vpop.permute.xlu1 %108  ;;  %v112_v13 = vsel %vm111_vm0, %v95_v11, %v101_v9 }
  0x91   :  { %v105_v14 = vpop.permute.xlu0 %104 }
  0x92   :  { %v114_v15 = vsel %vm113_vm1, %v112_v13, %v105_v14 }
  0x93   :  { %v116_v16 = vsel %vm115_vm2, %v114_v15, %v109_v12 }
  0x94   :  { %v118_v17 = vsel %vm117_vm3, %v116_v16, 0.0 }
  0x95   :  { %v119_v18 = vpack.c.bf16 %v118_v17, %v118_v17 }
  0x97   :  { %414 = vmatmul.msk.bf16.vlgmr.msra.gmra.mxu0 %vm130_vm4, %v119_v18 }
 0x114   :  { %v143_v28 = vpop.f32.mrf.mxu0 }
 0x115   :  { %v144_v29 = vadd.f32 %v546_v27, %v143_v28 }
 0x117   :  { %v147_v30 = vmax.f32 %v144_v29, 0.0 }
 0x119   :  { %v148_v31 = vpack.c.bf16 %v147_v30, %v147_v30 }
 0x11b   :  { %223 = vmatmul.bf16.vlgmr.msra.gmra.mxu1 %v148_v31 }
 0x11c   :  { %v145_v32 = vpop.f32.mrf.mxu0 }
 0x198   :  { %v224_v42 = vpop.f32.mrf.mxu1 }
 0x199   :  { %v225_v43 = vadd.f32 %v547_v41, %v224_v42 }
 0x19b   :  { %v228_v44 = vmax.f32 %v225_v43, 0.0 }
 0x19d   :  { %v229_v45 = vpack.c.bf16 %v228_v44, %v228_v44 }
 0x19f   :  { %304 = vmatmul.bf16.vlgmr.msra.gmra.mxu2 %v229_v45 }
 0x1a0   :  { %v226_v46 = vpop.f32.mrf.mxu1 }
 0x222   :  { %v305_v50 = vpop.f32.mrf.mxu2 }
 0x223   :  { %v306_v51 = vadd.f32 %v548_v49, %v305_v50 }
 0x225   :  { %v309_v52 = vmax.f32 %v306_v51, 0.0 }
 0x227   :  { %v310_v53 = vpack.c.bf16 %v309_v52, %v309_v52 }
 0x229   :  { %385 = vmatmul.bf16.vlgmr.msra.gmra.mxu3 %v310_v53 }
 0x22a   :  { %v307_v54 = vpop.f32.mrf.mxu2 }
 0x2ac   :  { %v386_v56 = vpop.f32.mrf.mxu3 }
 0x2ad   :  { %v387_v57 = vadd.f32 %v549_v55, %v386_v56 }
 0x2af   :  { %390 = vst [vmem:[#allocation11] sm:$0x3] %v387_v57 }
 0x2b0   :  { %401 = dma.vmem_to_hbm [thread:$0]  %s397_s23, 32, %s399_s26, [#allocation4]  }
 0x2b4   :  { %v388_v58 = vpop.f32.mrf.mxu3 }
 0x2b5   :  { %700 = dma.done.wait [#allocation4], 32  }
 0x2b6   :  { %701 = vsyncadd [#allocation4], 4294967264 }
 0x2b7   :  { %406 = vsyncpa [#allocation3], 1 }
 0x2b8   :  { %407 = vsyncpa [#allocation6], 1 }
 0x2b9   :  { %408 = vsyncpa [#allocation9], 1 }
 0x2ba   :  { %409 = vsyncpa [#allocation4], 1 }

</bundles_post_ra>
